<compile_context>
chip_gen: v6e
topology: v6e:2x2x1
jax: 0.10.0
libtpu: 0.0.40
codegen_flags: <defaults>
</compile_context>

<pallas_src>
import jax
import jax.numpy as jnp
from jax.experimental import pallas as pl
from jax.experimental.pallas import tpu as pltpu


HIDDEN = 128     # shared layer width (nn.Linear(state_dim, 128))
OUT_W = 128      # lane-dense fused head / output width (>= action_dim + 1)


def _round_up(x, m):
    return ((x + m - 1) // m) * m


def _make_kernel(action_dim):
    """Kernel closure over the static action dimension."""

    def kernel(x_ref, w1_ref, b1_ref, wh_ref, bh_ref, out_ref):
        x = x_ref[...]                                               # (TB, S)

        # shared = relu(x @ W1 + b1)   (f32 accumulation on the MXU)
        h = jnp.dot(x, w1_ref[...], preferred_element_type=jnp.float32)
        h = jnp.maximum(h + b1_ref[...], 0.0)                        # (TB, 128)

        # Fused actor+critic head: one lane-dense 128-wide matmul.
        #   lanes 0..A-1 : actor logits, lane A : critic value, rest : 0
        head = jnp.dot(h.astype(wh_ref.dtype), wh_ref[...],
                       preferred_element_type=jnp.float32)
        head = head + bh_ref[...]                                    # (TB, 128)

        lane = jax.lax.broadcasted_iota(jnp.int32, head.shape, 1)
        actor = lane < action_dim

        # Numerically-stable softmax restricted to the actor lanes.
        # EXACT division (not approx reciprocal) so probs sum to 1 to f32
        # rounding; the kernel is HBM-bound so the divide is free anyway.
        m = jnp.max(jnp.where(actor, head, -jnp.inf), axis=-1, keepdims=True)
        e = jnp.exp(jnp.where(actor, head - m, -jnp.inf))            # 0 off-actor
        s = jnp.sum(e, axis=-1, keepdims=True)
        probs = e / s

        # Single lane-dense output block: probs in actor lanes, raw value in
        # lane A, zeros elsewhere (unmasked 128-wide vector stores).
        out_ref[...] = jnp.where(lane == action_dim, head,
                                 probs).astype(out_ref.dtype)

    return kernel


def prepare_params(params, compute_dtype=jnp.float32):
    """One-time packing/casting of the parameters (hoisted out of the hot path).

    Packs the actor and critic heads into one lane-dense (128, 128) weight and
    a (1, 128) bias (actor in lanes [0, A), critic value in lane A, zeros
    elsewhere) and applies the optional bf16 cast on the bandwidth-heavy
    operands (pays on v5e/v6e/v7x alike; MXU accumulation stays f32).

    Returns (w1, b1, w_heads, b_heads, action_dim).  action_dim must remain a
    static Python int -- close over the returned tuple under jax.jit.
    """
    w1, b1, wa, ba, wc, bc = params
    A = wa.shape[1]
    assert A + 1 <= OUT_W, "action_dim + 1 must fit in the 128-wide fused head"
    pad_w = jnp.zeros((HIDDEN, OUT_W - A - 1), jnp.float32)
    pad_b = jnp.zeros((1, OUT_W - A - 1), jnp.float32)
    w_heads = jnp.concatenate([wa, wc, pad_w], axis=1)               # (128,128)
    b_heads = jnp.concatenate([ba, bc, pad_b], axis=1)               # (1,128)
    return (w1.astype(compute_dtype), b1.astype(jnp.float32),
            w_heads.astype(compute_dtype), b_heads.astype(jnp.float32), A)


def actor_critic_forward(state, prepped, *, tile_b=None,
                         out_dtype=jnp.float32):
    """state: (B, state_dim).  prepped: output of prepare_params().

    Returns (probs (B, A), value (B, 1)).  Call under jax.jit so the final
    lane slices fuse into their consumers instead of running as extra passes.
    """
    w1, b1, w_heads, b_heads, A = prepped
    B, S = state.shape

    x = state.astype(w1.dtype)   # no-op on the f32 path

    # Batch tiling: big tiles amortize per-grid-step overhead; keep >= 2 grid
    # steps when B allows so both v7x TensorCores get work on the "parallel"
    # axis.  No zero-pad copy: the partial last tile is handled by Pallas
    # (rows are independent; out-of-bounds writes are discarded).
    if tile_b is None:
        tile_b = min(4096, max(8, _round_up(pl.cdiv(B, 2), 8)))
    tile_b = max(8, (tile_b // 8) * 8)
    grid = (pl.cdiv(B, tile_b),)

    in_bytes = jnp.finfo(x.dtype).bits // 8
    out_bytes = jnp.finfo(out_dtype).bits // 8
    cost = pl.CostEstimate(
        flops=2 * B * (S * HIDDEN + HIDDEN * OUT_W),
        transcendentals=B * OUT_W,
        bytes_accessed=(B * S * in_bytes
                        + (S * HIDDEN + HIDDEN * OUT_W) * in_bytes
                        + (HIDDEN + OUT_W) * 4
                        + B * OUT_W * out_bytes))

    out = pl.pallas_call(
        _make_kernel(A),
        out_shape=jax.ShapeDtypeStruct((B, OUT_W), out_dtype),
        grid=grid,
        in_specs=[
            pl.BlockSpec((tile_b, S), lambda i: (i, 0)),        # state tile
            pl.BlockSpec((S, HIDDEN), lambda i: (0, 0)),        # W1 (resident)
            pl.BlockSpec((1, HIDDEN), lambda i: (0, 0)),        # b1
            pl.BlockSpec((HIDDEN, OUT_W), lambda i: (0, 0)),    # fused W_heads
            pl.BlockSpec((1, OUT_W), lambda i: (0, 0)),         # fused b_heads
        ],
        out_specs=pl.BlockSpec((tile_b, OUT_W), lambda i: (i, 0)),
        compiler_params=pltpu.CompilerParams(
            dimension_semantics=("parallel",)),
        cost_estimate=cost,
    )(x, w1, b1, w_heads, b_heads)

    probs = out[:, :A]            # fuse into consumers under jit
    value = out[:, A:A + 1]
    return probs, value


def init_params(key, state_dim, action_dim):
    """Deterministic init mimicking torch.nn.Linear default U[-1/sqrt(fan_in), +]."""
    k = jax.random.split(key, 6)

    def uni(kk, shape, fan_in):
        bound = 1.0 / jnp.sqrt(jnp.float32(fan_in))
        return jax.random.uniform(kk, shape, jnp.float32, -bound, bound)

    w1 = uni(k[0], (state_dim, HIDDEN), state_dim)
    b1 = uni(k[1], (1, HIDDEN), state_dim)
    wa = uni(k[2], (HIDDEN, action_dim), HIDDEN)
    ba = uni(k[3], (1, action_dim), HIDDEN)
    wc = uni(k[4], (HIDDEN, 1), HIDDEN)
    bc = uni(k[5], (1, 1), HIDDEN)
    return (w1, b1, wa, ba, wc, bc)


def reference_forward(state, params):
    w1, b1, wa, ba, wc, bc = params
    h = jnp.maximum(state @ w1 + b1, 0.0)
    probs = jax.nn.softmax(h @ wa + ba, axis=-1)
    value = h @ wc + bc
    return probs, value


# TODO(synk): get_action's Categorical sampling / log_prob is host-side control
# logic in the PyTorch module and is intentionally not part of the kernel.

if __name__ == "__main__":
    key = jax.random.PRNGKey(0)
    B, STATE_DIM, ACTION_DIM = 16, 16, 8

    kx, kp = jax.random.split(key)
    state = jax.random.normal(kx, (B, STATE_DIM), dtype=jnp.float32)
    params = init_params(kp, STATE_DIM, ACTION_DIM)

    # One-time param prep (hoisted out of the per-step hot path).
    prepped_f32 = prepare_params(params)
    prepped_bf16 = prepare_params(params, compute_dtype=jnp.bfloat16)

    ref_probs, ref_value = reference_forward(state, params)

    # --- f32 path, small batch (two tiny tiles) ---
    fwd = jax.jit(lambda s: actor_critic_forward(s, prepped_f32))
    probs, value = fwd(state)
    jax.block_until_ready((probs, value))
    assert probs.shape == (B, ACTION_DIM) and value.shape == (B, 1)
    assert jnp.allclose(probs, ref_probs, atol=1e-3, rtol=1e-3)
    assert jnp.allclose(value, ref_value, atol=1e-3, rtol=1e-3)
    assert jnp.allclose(jnp.sum(probs, axis=-1), 1.0, atol=1e-5)

    # --- f32 path, larger ragged batch (partial last tile, no pad copy) ---
    B2 = 600
    state2 = jax.random.normal(jax.random.PRNGKey(1), (B2, STATE_DIM),
                               dtype=jnp.float32)
    probs2, value2 = jax.jit(
        lambda s: actor_critic_forward(s, prepped_f32))(state2)
    jax.block_until_ready((probs2, value2))
    ref_probs2, ref_value2 = reference_forward(state2, params)
    assert probs2.shape == (B2, ACTION_DIM) and value2.shape == (B2, 1)
    assert jnp.allclose(probs2, ref_probs2, atol=1e-3, rtol=1e-3)
    assert jnp.allclose(value2, ref_value2, atol=1e-3, rtol=1e-3)
    assert jnp.allclose(jnp.sum(probs2, axis=-1), 1.0, atol=1e-5)

    # --- bf16 operand path (bandwidth win on v5e/v6e/v7x), loose checks ---
    probs_bf, value_bf = jax.jit(
        lambda s: actor_critic_forward(s, prepped_bf16))(state)
    jax.block_until_ready((probs_bf, value_bf))
    assert probs_bf.shape == (B, ACTION_DIM) and value_bf.shape == (B, 1)
    assert jnp.allclose(jnp.sum(probs_bf, axis=-1), 1.0, atol=1e-3)
    assert jnp.allclose(probs_bf, ref_probs, atol=5e-2, rtol=5e-2)
    assert jnp.allclose(value_bf, ref_value, atol=5e-2, rtol=5e-2)

    # --- bf16 output path (halves the dominant HBM writeback), loose checks ---
    probs_o16, value_o16 = jax.jit(
        lambda s: actor_critic_forward(s, prepped_f32,
                                       out_dtype=jnp.bfloat16))(state)
    jax.block_until_ready((probs_o16, value_o16))
    assert probs_o16.dtype == jnp.bfloat16 and value_o16.dtype == jnp.bfloat16
    assert jnp.allclose(probs_o16.astype(jnp.float32), ref_probs,
                        atol=1e-2, rtol=1e-2)
    assert jnp.allclose(value_o16.astype(jnp.float32), ref_value,
                        atol=1e-2, rtol=1e-2)

    print("KERNEL_OK")
</pallas_src>

<mosaic_0001>
module attributes {stable_mosaic.version = 11 : i64} {
  func.func @kernel(%arg0: i32, %arg1: memref<8x16xf32, #tpu.memory_space<vmem>>, %arg2: memref<16x128xf32, #tpu.memory_space<vmem>>, %arg3: memref<1x128xf32, #tpu.memory_space<vmem>>, %arg4: memref<128x128xf32, #tpu.memory_space<vmem>>, %arg5: memref<1x128xf32, #tpu.memory_space<vmem>>, %arg6: memref<8x128xf32, #tpu.memory_space<vmem>>) attributes {dimension_semantics = [#tpu.dimension_semantics<parallel>], iteration_bounds = array<i64: 2>, scalar_prefetch = 0 : i64, scratch_operands = 0 : i64, tpu.core_type = #tpu.core_type<tc>, window_params = [{transform_indices = @transform_0, window_bounds = array<i64: 8, 16>}, {pipeline_mode = #tpu.pipeline_mode<synchronous>, transform_indices = @transform_1, window_bounds = array<i64: 16, 128>}, {pipeline_mode = #tpu.pipeline_mode<synchronous>, transform_indices = @transform_2, window_bounds = array<i64: 1, 128>}, {pipeline_mode = #tpu.pipeline_mode<synchronous>, transform_indices = @transform_3, window_bounds = array<i64: 128, 128>}, {pipeline_mode = #tpu.pipeline_mode<synchronous>, transform_indices = @transform_4, window_bounds = array<i64: 1, 128>}, {transform_indices = @transform_5, window_bounds = array<i64: 8, 128>}]} {
    %c0 = arith.constant 0 : index
    %c0_0 = arith.constant 0 : index
    %0 = vector.load %arg1[%c0, %c0_0] : memref<8x16xf32, #tpu.memory_space<vmem>>, vector<8x16xf32>
    %c0_1 = arith.constant 0 : index
    %c0_2 = arith.constant 0 : index
    %1 = vector.load %arg2[%c0_1, %c0_2] : memref<16x128xf32, #tpu.memory_space<vmem>>, vector<16x128xf32>
    %cst = arith.constant dense<0.000000e+00> : vector<8x128xf32>
    %2 = tpu.matmul %0, %1, %cst {dimension_numbers = #tpu.dot_dimension_numbers<[1], [0], [0], [1], [0, 0, 1, 1], [], []>} : vector<8x16xf32>, vector<16x128xf32>, vector<8x128xf32> -> vector<8x128xf32>
    %c0_3 = arith.constant 0 : index
    %c0_4 = arith.constant 0 : index
    %3 = vector.load %arg3[%c0_3, %c0_4] : memref<1x128xf32, #tpu.memory_space<vmem>>, vector<1x128xf32>
    %4 = vector.broadcast %3 : vector<1x128xf32> to vector<8x128xf32>
    %5 = arith.addf %2, %4 : vector<8x128xf32>
    %cst_5 = arith.constant 0.000000e+00 : f32
    %6 = vector.broadcast %cst_5 : f32 to vector<8x128xf32>
    %7 = arith.maximumf %5, %6 : vector<8x128xf32>
    %c0_6 = arith.constant 0 : index
    %c0_7 = arith.constant 0 : index
    %8 = vector.load %arg4[%c0_6, %c0_7] : memref<128x128xf32, #tpu.memory_space<vmem>>, vector<128x128xf32>
    %cst_8 = arith.constant dense<0.000000e+00> : vector<8x128xf32>
    %9 = tpu.matmul %7, %8, %cst_8 {dimension_numbers = #tpu.dot_dimension_numbers<[1], [0], [0], [1], [0, 0, 1, 1], [], []>} : vector<8x128xf32>, vector<128x128xf32>, vector<8x128xf32> -> vector<8x128xf32>
    %c0_9 = arith.constant 0 : index
    %c0_10 = arith.constant 0 : index
    %10 = vector.load %arg5[%c0_9, %c0_10] : memref<1x128xf32, #tpu.memory_space<vmem>>, vector<1x128xf32>
    %11 = vector.broadcast %10 : vector<1x128xf32> to vector<8x128xf32>
    %12 = arith.addf %9, %11 : vector<8x128xf32>
    %13 = tpu.iota {dimensions = array<i32: 1>} : vector<8x128xi32>
    %c8_i32 = arith.constant 8 : i32
    %14 = vector.broadcast %c8_i32 : i32 to vector<8x128xi32>
    %15 = arith.cmpi slt, %13, %14 : vector<8x128xi32>
    %cst_11 = arith.constant 0xFF800000 : f32
    %16 = vector.broadcast %cst_11 : f32 to vector<8x128xf32>
    %17 = arith.select %15, %12, %16 : vector<8x128xi1>, vector<8x128xf32>
    %cst_12 = arith.constant dense<0xFF800000> : vector<8xf32>
    %18 = vector.multi_reduction <maximumf>, %17, %cst_12 [1] : vector<8x128xf32> to vector<8xf32>
    %19 = vector.shape_cast %18 : vector<8xf32> to vector<8x1xf32>
    %20 = vector.broadcast %19 : vector<8x1xf32> to vector<8x128xf32>
    %21 = arith.subf %12, %20 : vector<8x128xf32>
    %cst_13 = arith.constant 0xFF800000 : f32
    %22 = vector.broadcast %cst_13 : f32 to vector<8x128xf32>
    %23 = arith.select %15, %21, %22 : vector<8x128xi1>, vector<8x128xf32>
    %24 = math.exp %23 : vector<8x128xf32>
    %cst_14 = arith.constant dense<0.000000e+00> : vector<8xf32>
    %25 = vector.multi_reduction <add>, %24, %cst_14 [1] : vector<8x128xf32> to vector<8xf32>
    %26 = vector.shape_cast %25 : vector<8xf32> to vector<8x1xf32>
    %27 = vector.broadcast %26 : vector<8x1xf32> to vector<8x128xf32>
    %28 = arith.divf %24, %27 : vector<8x128xf32>
    %c8_i32_15 = arith.constant 8 : i32
    %29 = vector.broadcast %c8_i32_15 : i32 to vector<8x128xi32>
    %30 = arith.cmpi eq, %13, %29 : vector<8x128xi32>
    %31 = arith.select %30, %12, %28 : vector<8x128xi1>, vector<8x128xf32>
    %c0_16 = arith.constant 0 : index
    %c0_17 = arith.constant 0 : index
    %32 = vector.load %arg6[%c0_16, %c0_17] : memref<8x128xf32, #tpu.memory_space<vmem>>, vector<8x128xf32>
    tpu.vector_store %arg6[%c0_16, %c0_17], %31 {strides = array<i32>} : memref<8x128xf32, #tpu.memory_space<vmem>>, vector<8x128xf32>,
    return
  }
  func.func @transform_0(%arg0: i32) -> (i32, i32) {
    %c0_i32 = arith.constant 0 : i32
    %c0_i32_0 = arith.constant 0 : i32
    return %arg0, %c0_i32 : i32, i32
  }
  func.func @transform_1(%arg0: i32) -> (i32, i32) {
    %c0_i32 = arith.constant 0 : i32
    %c0_i32_0 = arith.constant 0 : i32
    %c0_i32_1 = arith.constant 0 : i32
    return %c0_i32, %c0_i32_0 : i32, i32
  }
  func.func @transform_2(%arg0: i32) -> (i32, i32) {
    %c0_i32 = arith.constant 0 : i32
    %c0_i32_0 = arith.constant 0 : i32
    %c0_i32_1 = arith.constant 0 : i32
    return %c0_i32, %c0_i32_0 : i32, i32
  }
  func.func @transform_3(%arg0: i32) -> (i32, i32) {
    %c0_i32 = arith.constant 0 : i32
    %c0_i32_0 = arith.constant 0 : i32
    %c0_i32_1 = arith.constant 0 : i32
    return %c0_i32, %c0_i32_0 : i32, i32
  }
  func.func @transform_4(%arg0: i32) -> (i32, i32) {
    %c0_i32 = arith.constant 0 : i32
    %c0_i32_0 = arith.constant 0 : i32
    %c0_i32_1 = arith.constant 0 : i32
    return %c0_i32, %c0_i32_0 : i32, i32
  }
  func.func @transform_5(%arg0: i32) -> (i32, i32) {
    %c0_i32 = arith.constant 0 : i32
    %c0_i32_0 = arith.constant 0 : i32
    return %arg0, %c0_i32 : i32, i32
  }
}

</mosaic_0001>

<bundles_post_ra>
// kernel: _lambda_.1
= control target key start
LH: loop header
LB: loop body
LE: loop exit
PB: predicated region body
PF: predicated region fallthrough
CT: control target
= control target key end

     0   :  { %10 = vsyncpa [#allocation3], 0  ;;  %s1061_s0 = inlined_call_operand.hbm [shape: f32[16,16], index: 0, kind: input, shape index: {}]   ;;  %s1062_s1 = inlined_call_operand.hbm [shape: f32[16,128], index: 1, kind: input, shape index: {}]   ;;  %s1063_s2 = inlined_call_operand.vmem [shape: f32[1,128], index: 2, kind: input, shape index: {}]   ;;  %s1064_s3 = inlined_call_operand.hbm [shape: f32[128,128], index: 3, kind: input, shape index: {}]   ;;  %s1065_s4 = inlined_call_operand.hbm [shape: f32[1,128], index: 4, kind: input, shape index: {}]   ;;  %s1066_s5 = inlined_call_operand.vmem [shape: f32[16,128], index: 5, kind: output, shape index: {}]  }
   0x1   :  { %12 = vsyncpa [#allocation3 + $0x1], 0 }
   0x2   :  { %13 = vsyncpa [#allocation5], 0 }
   0x3   :  { %14 = vsyncpa [#allocation8], 0  ;;  %s918_s18 = smov 0   ;;  %s920_s19 = smov 0  }
   0x4   :  { %s922_s20 = smov 0   ;;  %s924_s21 = smov 0  }
   0x5 LB: > { %s937_s22 = sadd.s32 4294967295, %s878_s21   ;;  %p40_p0 = scmp.ne.s32.totalorder %s870_s19, %s866_s18  ;;  %s878_s21 = sphi %s924_s21, %s1083_s21   ;;  %s874_s20 = sphi %s922_s20, %s1082_s20   ;;  %s870_s19 = sphi %s920_s19, %s1081_s19   ;;  %s866_s18 = sphi %s918_s18, %s1080_s18  }
   0x6   : > { %p1067_p1 = scmp.eq.s32.totalorder %s937_s22, 0  ;;  %p572_p2 = scmp.ge.s32.totalorder %s878_s21, 1 }
   0x7   : > { %p161_p3 = scmp.lt.s32.totalorder %s878_s21, 3  ;;  %s880_s25 = smov [#allocation4]  }
   0x8   : > { %p945_p4 = por %p1067_p1, %p40_p0  ;;  %s173_s26 = sshll.u32 %s880_s25, 4  ;;  %s174_s26 = int_to_ptr.vmem [resolvable:$true] %s173_s26 }
   0x9   : > { %p949_p5 = pnand %p572_p2, %p161_p3  ;;  %s881_s28 = smov [#allocation6]  }
   0xa   : > { %s1070_s23 = scalar_select %p945_p4, 1, 0 }
   0xb   : > { %s1071_s24 = scalar_select %p949_p5, 1, 0 }
   0xc   : > { %p666_p6 = pneg %p949_p5  ;;  %s189_s29 = sshll.u32 %s881_s28, 4  ;;  %s190_s29 = int_to_ptr.vmem [resolvable:$true] %s189_s29 }
   0xd   : > { %s882_s30 = smov [#allocation7]   ;;  %s741_s7 = scalar_lea.vmem %s174_s26, 256 }
   0xe   : > { %p957_p7 = pnand %p666_p6, %p1067_p1  ;;  %s203_s6 = sshll.u32 %s882_s30, 4  ;;  %s204_s6 = int_to_ptr.vmem [resolvable:$true] %s203_s6 }
   0xf   : > { %p742_p9 = scmp.ne.s32.totalorder %s174_s26, %s741_s7  ;;  %p749_p12 = scmp.lt.s32.totalorder %s174_s26, %s174_s26 }
  0x10   : > { %p732_p8 = pneg %p957_p7  ;;  %p750_p13 = scmp.lt.s32.totalorder %s741_s7, %s741_s7 }
  0x12   : > { %p744_p10 = pnand %p742_p9, %p732_p8  ;;  %p751_p0 = por %p750_p13, %p749_p12 }
  0x14   : > { %p745_p11 = pneg %p744_p10 }
  0x16   : > { %p752_p2 = pnand %p751_p0, %p745_p11 }
  0x18   : > { %755 = shalt.err (!%p752_p2)
}
  0x19   : > { %s883_s8 = smov 128   ;;  %s884_s9 = smov 8  }
  0x1a   : > { %669 = dma.hbm_to_vmem [thread:$0]  (!%p957_p7), %s1062_s1, 256, %s174_s26, [#allocation5], %s883_s8, %s883_s8, %s884_s9  }
  0x1b   : > { %s767_s12 = scalar_lea.vmem %s190_s29, 2048  ;;  %p775_p10 = scmp.lt.s32.totalorder %s190_s29, %s190_s29 }
  0x1c   : > { %p768_p3 = scmp.ne.s32.totalorder %s190_s29, %s767_s12  ;;  %p776_p1 = scmp.lt.s32.totalorder %s767_s12, %s767_s12 }
  0x1e   : > { %p770_p6 = pnand %p768_p3, %p732_p8  ;;  %p777_p12 = por %p776_p1, %p775_p10 }
  0x20   : > { %p771_p9 = pneg %p770_p6 }
  0x22   : > { %p778_p11 = pnand %p777_p12, %p771_p9 }
  0x24   : > { %781 = shalt.err (!%p778_p11)
}
  0x25   : > { %672 = dma.hbm_to_vmem [thread:$0]  (!%p957_p7), %s1064_s3, 2048, %s190_s29, [#allocation5], %s883_s8, %s883_s8, %s884_s9  }
  0x26   : > { %s793_s15 = scalar_lea.vmem %s204_s6, 16  ;;  %s800_s16 = scalar_lea.vmem %s204_s6, 32 }
  0x27   : > { %p794_p13 = scmp.ne.s32.totalorder %s204_s6, %s793_s15  ;;  %p801_p3 = scmp.lt.s32.totalorder %s204_s6, %s204_s6 }
  0x28   : > { %p802_p6 = scmp.lt.s32.totalorder %s800_s16, %s793_s15 }
  0x29   : > { %p796_p0 = pnand %p794_p13, %p732_p8 }
  0x2a   : > { %p803_p1 = por %p802_p6, %p801_p3 }
  0x2b   : > { %p797_p2 = pneg %p796_p0 }
  0x2d   : > { %p804_p9 = pnand %p803_p1, %p797_p2 }
  0x2f   : > { %807 = shalt.err (!%p804_p9)
}
  0x30   : > { %675 = dma.hbm_to_vmem [thread:$0]  (!%p957_p7), %s1065_s4, 16, %s204_s6, [#allocation8]  }
  0x31   : > { %s988_s25 = sadd.s32 1, %s878_s21   ;;  %s27_s28 = sadd.s32 1, %s874_s20 }
  0x32   : > { %s24_s26 = ssub.s32 %s878_s21, %s988_s25  ;;  %p34_p10 = scmp.ne.s32.totalorder %s874_s20, %s870_s19 }
  0x33   : > { %p25_p8 = scmp.eq.s32.totalorder %s24_s26, 0  ;;  %p35_p12 = scmp.eq.s32.totalorder %s878_s21, 0 }
  0x34   : > { %p683_p11 = scmp.lt.s32.totalorder %s878_s21, 2  ;;  %s214_s29 = sand.u32 1, %s874_s20  }
  0x35   : > { %s998_s27 = scalar_select %p25_p8, %s874_s20, %s27_s28  }
  0x36   : > { %p36_p13 = por %p35_p12, %p34_p10  ;;  %s577_s30 = sshll.u32 %s214_s29, 3 }
  0x37   : > { %s578_s7 = sshll.u32 %s878_s21, 7  ;;  %s218_s6 = scalar_lea.vmem [#allocation2], %s577_s30 }
  0x38   : > { %s1005_s10 = scalar_lea.hbm %s1061_s0, %s578_s7  ;;  %s225_s11 = sshll.u32 %s218_s6, 4  ;;  %s226_s11 = int_to_ptr.vmem [resolvable:$true] %s225_s11 }
  0x39   : > { %p1007_p7 = pnand %p683_p11, %p36_p13  ;;  %s215_s13 = scalar_lea.sflag [#allocation3], %s214_s29 }
  0x3a   : > { %s808_s14 = scalar_lea.hbm %s1005_s10, 128  ;;  %s813_s16 = scalar_lea.hbm %s1061_s0, 256 }
  0x3b   : > { %p809_p0 = scmp.ne.s32.totalorder %s1005_s10, %s808_s14  ;;  %p810_p2 = pneg %p1007_p7 }
  0x3c   : > { %p814_p1 = scmp.lt.s32.totalorder %s1005_s10, %s1061_s0  ;;  %p815_p9 = scmp.lt.s32.totalorder %s813_s16, %s808_s14 }
  0x3d   : > { %p811_p3 = pnand %p810_p2, %p809_p0 }
  0x3e   : > { %p816_p8 = por %p815_p9, %p814_p1 }
  0x3f   : > { %p812_p6 = pneg %p811_p3 }
  0x41   : > { %p817_p10 = pnand %p816_p8, %p812_p6 }
  0x43   : > { %820 = shalt.err (!%p817_p10)
}
  0x44   : > { %s821_s26 = scalar_lea.vmem %s226_s11, 128  ;;  %s885_s28 = smov [#allocation2]  }
  0x45   : > { %p822_p12 = scmp.ne.s32.totalorder %s226_s11, %s821_s26  ;;  %s826_s29 = sshll.u32 %s885_s28, 4  ;;  %s827_s29 = int_to_ptr.vmem [resolvable:$false] %s826_s29 }
  0x46   : > { %s828_s30 = scalar_lea.vmem %s827_s29, 256  ;;  %p829_p0 = scmp.lt.s32.totalorder %s226_s11, %s827_s29 }
  0x47   : > { %p824_p11 = pnand %p822_p12, %p810_p2  ;;  %p830_p3 = scmp.lt.s32.totalorder %s828_s30, %s821_s26 }
  0x49   : > { %p825_p13 = pneg %p824_p11  ;;  %p831_p4 = por %p830_p3, %p829_p0 }
  0x4b   : > { %p832_p5 = pnand %p831_p4, %p825_p13 }
  0x4d   : > { %835 = shalt.err (!%p832_p5)
}
  0x4e   : > { %679 = dma.hbm_to_vmem [thread:$0]  (!%p1007_p7), %s1005_s10, 128, %s226_s11, %s215_s13  }
  0x4f   : > { %p1074_p6 = scmp.ne.s32.totalorder %s1071_s24, 0 }
  0x50   : > { %s236_s7 = sand.u32 (!%p1074_p6), 1, %s870_s19   ;;  %p1075_p2 = scmp.ne.s32.totalorder (!%p1074_p6), %s1070_s23, 0 }
  0x51   : > { %234 = sbr.rel (%p1074_p6) target bundleno = 805 (0x325), region = 40  ;;  %s580_s8 = sshll.u32 (!%p1074_p6), %s236_s7, 3 }
  0x52   : > { %s237_s9 = scalar_lea.sflag (!%p1074_p6), [#allocation3], %s236_s7  ;;  %s240_s6 = scalar_lea.vmem (!%p1074_p6), [#allocation2], %s580_s8 }
  0x56   : > { %853 = dma.done.wait (%p1075_p2), %s237_s9, 128  }
  0x57   : > { %855 = vsyncadd (%p1075_p2), %s237_s9, 4294967168  ;;  %p1076_p4 = scmp.eq.s32.totalorder %s937_s22, 0 }
  0x59   : > { %857 = dma.done.wait (%p1076_p4), [#allocation5], 2304   ;;  %p1077_p5 = pmov %p1076_p4 }
  0x5a   : > { %p1078_p7 = pmov %p1076_p4 }
  0x5b   : > { %859 = vsyncadd (%p1077_p5), [#allocation5], 4294964992 }
  0x5c   : > { %861 = dma.done.wait (%p1078_p7), [#allocation8], 16   ;;  %p1079_p1 = pmov %p1076_p4 }
  0x5d   : > { %v886_v0 = vmov 0.0   ;;  %vm887_vm0 = vmmov 0   ;;  %v284_v1 = vld [vmem:[#allocation4 + $0x8] sm:$0xff]  ;;  %v283_v2 = vld [vmem:[#allocation4] sm:$0xff]  ;;  %v282_v3 = vld [vmem:[%s240_s6] sm:$0xff]  ;;  %vm292_vm1 = vcmask 130048   ;;  %v460_v25 = vlaneseq }
  0x5e   : > { %863 = vsyncadd (%p1079_p1), [#allocation8], 4294967280  ;;  %610 = vmatprep.subr.mxu0 %v886_v0  ;;  %614 = vmatprep.mubr.msk.f32.mxu0 %vm887_vm0, %v886_v0  ;;  %v382_v4 = vld [vmem:[#allocation6 + $0x78] sm:$0xff]  ;;  %v381_v5 = vld [vmem:[#allocation6 + $0x70] sm:$0xff]  ;;  %p278_p9 = scmp.lt.s32.totalorder %s937_s22, 1 }
  0x5f   : > { %617 = vmatprep.subr.mxu1 %v886_v0  ;;  %649 = vmatprep.mubr.msk.f32.mxu1 %vm887_vm0, %v886_v0  ;;  %v380_v6 = vld [vmem:[#allocation6 + $0x68] sm:$0xff]  ;;  %v379_v7 = vld [vmem:[#allocation6 + $0x60] sm:$0xff]  ;;  %v378_v8 = vld [vmem:[#allocation6 + $0x58] sm:$0xff]  ;;  %v461_v26 = vand.u32 127, %v460_v25 }
  0x60   : > { %611 = vmatpush3.msra.mxu0 %v284_v1  ;;  %618 = vmatpush3.msra.mxu1 %v382_v4  ;;  %v377_v9 = vld [vmem:[#allocation6 + $0x50] sm:$0xff]  ;;  %v376_v10 = vld [vmem:[#allocation6 + $0x48] sm:$0xff]  ;;  %v375_v11 = vld [vmem:[#allocation6 + $0x40] sm:$0xff]  ;;  %s1085_s22 = smov (!%p278_p9, %s937_s22), 1 }
  0x61   : > { %612 = vmatprep.subr.mxu0 %v886_v0  ;;  %619 = vmatprep.subr.mxu1 %v886_v0  ;;  %v374_v12 = vld [vmem:[#allocation6 + $0x38] sm:$0xff]  ;;  %v373_v13 = vld [vmem:[#allocation6 + $0x30] sm:$0xff]  ;;  %v372_v14 = vld [vmem:[#allocation6 + $0x28] sm:$0xff]  ;;  %vm462_vm2 = vcmp.lt.s32.totalorder %v461_v26, 8  ;;  %s584_s10 = sshll.u32 %s1085_s22, 3  ;;  %vm474_vm3 = vcmp.eq.s32.totalorder %v461_v26, 8 }
  0x62   : > { %613 = vmatpush3.msra.mxu0 %v283_v2  ;;  %620 = vmatpush3.msra.mxu1 %v381_v5  ;;  %v371_v15 = vld [vmem:[#allocation6 + $0x20] sm:$0xff]  ;;  %v370_v16 = vld [vmem:[#allocation6 + $0x18] sm:$0xff]  ;;  %v369_v17 = vld [vmem:[#allocation6 + $0x10] sm:$0xff]  ;;  %s281_s13 = scalar_lea.vmem %s1066_s5, %s584_s10 }
  0x63   : > { %615 = vmatmul.mubr.msk.f32.vlgmr.msra.gmra.mxu0 %vm292_vm1, %v282_v3  ;;  %621 = vmatprep.subr.mxu1 %v886_v0  ;;  %v368_v18 = vld [vmem:[#allocation6 + $0x8] sm:$0xff]  ;;  %v367_v19 = vld [vmem:[#allocation6] sm:$0xff] }
  0x64   : > { %622 = vmatpush3.msra.mxu1 %v380_v6  ;;  %v585_v20 = vld [vmem:[%s1063_s2] ss:$0 sm:$0xff] }
  0x65   : > { %623 = vmatprep.subr.mxu1 %v886_v0  ;;  %v587_v27 = vld [vmem:[#allocation7] ss:$0 sm:$0xff] }
  0x66   : > { %624 = vmatpush3.msra.mxu1 %v379_v7 }
  0x67   : > { %625 = vmatprep.subr.mxu1 %v886_v0 }
  0x68   : > { %626 = vmatpush3.msra.mxu1 %v378_v8 }
  0x69   : > { %627 = vmatprep.subr.mxu1 %v886_v0 }
  0x6a   : > { %628 = vmatpush3.msra.mxu1 %v377_v9 }
  0x6b   : > { %629 = vmatprep.subr.mxu1 %v886_v0 }
  0x6c   : > { %630 = vmatpush3.msra.mxu1 %v376_v10 }
  0x6d   : > { %631 = vmatprep.subr.mxu1 %v886_v0 }
  0x6e   : > { %632 = vmatpush3.msra.mxu1 %v375_v11 }
  0x6f   : > { %633 = vmatprep.subr.mxu1 %v886_v0 }
  0x70   : > { %634 = vmatpush3.msra.mxu1 %v374_v12 }
  0x71   : > { %635 = vmatprep.subr.mxu1 %v886_v0 }
  0x72   : > { %636 = vmatpush3.msra.mxu1 %v373_v13 }
  0x73   : > { %637 = vmatprep.subr.mxu1 %v886_v0 }
  0x74   : > { %638 = vmatpush3.msra.mxu1 %v372_v14 }
  0x75   : > { %639 = vmatprep.subr.mxu1 %v886_v0 }
  0x76   : > { %640 = vmatpush3.msra.mxu1 %v371_v15 }
  0x77   : > { %641 = vmatprep.subr.mxu1 %v886_v0 }
  0x78   : > { %642 = vmatpush3.msra.mxu1 %v370_v16 }
  0x79   : > { %643 = vmatprep.subr.mxu1 %v886_v0 }
  0x7a   : > { %644 = vmatpush3.msra.mxu1 %v369_v17 }
  0x7b   : > { %645 = vmatprep.subr.mxu1 %v886_v0 }
  0x7c   : > { %646 = vmatpush3.msra.mxu1 %v368_v18 }
  0x7d   : > { %647 = vmatprep.subr.mxu1 %v886_v0 }
  0x7e   : > { %648 = vmatpush3.msra.mxu1 %v367_v19 }
 0x123   : > { %v362_v21 = vpop.f32.mrf.mxu0 }
 0x124   : > { %v363_v22 = vadd.f32 %v585_v20, %v362_v21 }
 0x125   : > { %v616_v23 = vpop.f32.mrf.mxu0 }
 0x126   : > { %v366_v24 = vmax.f32 %v363_v22, 0.0 }
 0x128   : > { %650 = vmatmul.mubr.f32.vlgmr.msra.gmra.mxu1 %v366_v24 }
 0x1e8   : > { %v456_v28 = vpop.f32.mrf.mxu1 }
 0x1e9   : > { %v457_v29 = vadd.f32 %v587_v27, %v456_v28 }
 0x1ea   : > { %v651_v30 = vpop.f32.mrf.mxu1 }
 0x1eb   : > { %v463_v31 = vsel %vm462_vm2, %v457_v29, -inf }
 0x1ec   : > { %464 = vmax.xlane.f32.xlu0 %v463_v31 }
 0x275   : > { %v465_v32 = vpop.xlane.xlu0 %464 }
 0x276   : > { %v466_v33 = vsub.f32 %v457_v29, %v465_v32 }
 0x278   : > { %v467_v34 = vsel %vm462_vm2, %v466_v33, -inf }
 0x279   : > { %v468_v35 = vmul.f32 1.442695, %v467_v34 }
 0x27b   : > { %726 = vpow2.f32 %v468_v35 }
 0x288   : > { %v727_v36 = vpop.eup %726 }
 0x289   : > { %470 = vadd.xlane.f32.xlu0 %v727_v36 }
 0x312   : > { %v471_v37 = vpop.xlane.xlu0 %470 }
 0x313   : > { %728 = vrcp.f32 %v471_v37 }
 0x320   : > { %v729_v38 = vpop.eup %728 }
 0x321   : > { %v473_v39 = vmul.f32 %v729_v38, %v727_v36 }
 0x323   : > { %v475_v40 = vsel %vm474_vm3, %v457_v29, %v473_v39 }
 0x324   : > { %476 = vst [vmem:[%s281_s13] sm:$0xff] %v475_v40 }
 0x325 PF: > { %p17_p8 = scmp.ge.s32.totalorder %s988_s25, 4   ;;  %s1080_s18 = smov %s870_s19 }
 0x326   : > { %s1081_s19 = smov %s874_s20  ;;  %s1082_s20 = smov %s998_s27 }
 0x327   : > { %s1083_s21 = smov %s988_s25  ;;  %19 = sbr.rel (!%p17_p8) target bundleno = 5 (0x5), region = 92 }
 0x32c   :  { %496 = vsyncpa [#allocation3], 1 }
 0x32d   :  { %498 = vsyncpa [#allocation3 + $0x1], 1 }
 0x32e   :  { %499 = vsyncpa [#allocation5], 1 }
 0x32f   :  { %500 = vsyncpa [#allocation8], 1 }

</bundles_post_ra>
